<compile_context>
chip_gen: v7x
topology: tpu7x:2x2x1
jax: 0.10.0
libtpu: 0.0.40
codegen_flags: <defaults>
</compile_context>

<pallas_src>
import functools
import math

import jax
import jax.numpy as jnp
from jax import lax
from jax.experimental import pallas as pl
from jax.experimental.pallas import tpu as pltpu

LAYERNORM_EPS = 1e-12


def _round_up(v, m):
    return (v + m - 1) // m * m


def _generator_predictions_kernel(x_ref, w_ref, b_ref, gamma_ref, beta_ref,
                                  o_ref, *, inv_e):
    # x: (TM, Hp), w: (Ep, Hp)  ->  (TM, Ep)   (MXU, f32 accumulate)
    y = lax.dot_general(
        x_ref[...], w_ref[...],
        dimension_numbers=(((1,), (1,)), ((), ())),
        preferred_element_type=jnp.float32,
    )
    y = y + b_ref[...].astype(jnp.float32)

    # Exact GELU: 0.5 * y * (1 + erf(y / sqrt(2)))  -- matches PyTorch 'gelu'.
    y = 0.5 * y * (1.0 + lax.erf(y * (1.0 / math.sqrt(2.0))))

    # Fused LayerNorm over the real embedding width.  Padded columns of y are
    # exactly zero (zero weight rows + zero bias -> gelu(0) == 0), so plain
    # sums over the padded lane width are correct when scaled by 1/E_real.
    s1 = jnp.sum(y, axis=-1, keepdims=True)
    s2 = jnp.sum(y * y, axis=-1, keepdims=True)
    mean = s1 * inv_e
    var = s2 * inv_e - mean * mean
    inv_std = lax.rsqrt(var + LAYERNORM_EPS)
    y = (y - mean) * inv_std
    y = y * gamma_ref[...].astype(jnp.float32) + beta_ref[...].astype(jnp.float32)

    o_ref[...] = y.astype(o_ref.dtype)


def electra_generator_predictions(x, dense_w, dense_b, ln_gamma, ln_beta, *,
                                  tm=512):
    """x: [B, S, H]; dense_w: [E, H] (PyTorch nn.Linear layout); -> [B, S, E]."""
    B, S, H = x.shape
    E = dense_w.shape[0]
    M = B * S

    # Lane-dense feature dims; row tile a multiple of 8, capped at `tm`.
    Hp = _round_up(H, 128)
    Ep = _round_up(E, 128)
    TM = min(tm, _round_up(M, 8))
    Mp = _round_up(M, TM)

    x2d = x.reshape(M, H)
    if (Mp, Hp) != (M, H):
        x2d = jnp.pad(x2d, ((0, Mp - M), (0, Hp - H)))
    w_p = dense_w if (Ep, Hp) == (E, H) else jnp.pad(
        dense_w, ((0, Ep - E), (0, Hp - H)))
    b_p = (dense_b if Ep == E else jnp.pad(dense_b, (0, Ep - E))).reshape(1, Ep)
    g_p = (ln_gamma if Ep == E else jnp.pad(ln_gamma, (0, Ep - E))).reshape(1, Ep)
    be_p = (ln_beta if Ep == E else jnp.pad(ln_beta, (0, Ep - E))).reshape(1, Ep)

    grid = (Mp // TM,)

    out2d = pl.pallas_call(
        functools.partial(_generator_predictions_kernel, inv_e=1.0 / E),
        out_shape=jax.ShapeDtypeStruct((Mp, Ep), x.dtype),
        grid_spec=pltpu.PrefetchScalarGridSpec(
            num_scalar_prefetch=0,
            grid=grid,
            in_specs=[
                pl.BlockSpec((TM, Hp), lambda i: (i, 0)),   # x: tiled over rows
                pl.BlockSpec((Ep, Hp), lambda i: (0, 0)),   # W: resident
                pl.BlockSpec((1, Ep), lambda i: (0, 0)),    # bias: resident
                pl.BlockSpec((1, Ep), lambda i: (0, 0)),    # gamma: resident
                pl.BlockSpec((1, Ep), lambda i: (0, 0)),    # beta: resident
            ],
            out_specs=pl.BlockSpec((TM, Ep), lambda i: (i, 0)),
        ),
        compiler_params=pltpu.CompilerParams(
            dimension_semantics=("parallel",),
        ),
    )(x2d, w_p, b_p, g_p, be_p)

    return out2d[:M, :E].reshape(B, S, E)


def _reference(x, dense_w, dense_b, ln_gamma, ln_beta):
    y = jnp.einsum("bsh,eh->bse", x, dense_w) + dense_b
    y = 0.5 * y * (1.0 + lax.erf(y / jnp.sqrt(2.0)))
    mean = jnp.mean(y, axis=-1, keepdims=True)
    var = jnp.mean((y - mean) ** 2, axis=-1, keepdims=True)
    y = (y - mean) / jnp.sqrt(var + LAYERNORM_EPS)
    return y * ln_gamma + ln_beta


if __name__ == "__main__":
    # Small synthetic config: batch=2, seq=8, hidden_size=32, embedding_size=16
    B, S, H, E = 2, 8, 32, 16

    key = jax.random.PRNGKey(0)
    kx, kw, kb, kg, kbe = jax.random.split(key, 5)

    x = jax.random.normal(kx, (B, S, H), dtype=jnp.float32)
    dense_w = jax.random.normal(kw, (E, H), dtype=jnp.float32) * 0.05  # [out, in]
    dense_b = jax.random.normal(kb, (E,), dtype=jnp.float32) * 0.02
    ln_gamma = jnp.ones((E,), dtype=jnp.float32) + 0.1 * jax.random.normal(kg, (E,), dtype=jnp.float32)
    ln_beta = 0.1 * jax.random.normal(kbe, (E,), dtype=jnp.float32)

    out = electra_generator_predictions(x, dense_w, dense_b, ln_gamma, ln_beta)
    out = jax.block_until_ready(out)

    ref = _reference(x, dense_w, dense_b, ln_gamma, ln_beta)
    assert out.shape == (B, S, E)
    assert jnp.allclose(out, ref, atol=1e-4, rtol=1e-4), "mismatch vs reference"

    print("KERNEL_OK")
</pallas_src>

<mosaic_0001>
module attributes {stable_mosaic.version = 11 : i64} {
  func.func @_generator_predictions_kernel(%arg0: i32, %arg1: memref<16x128xf32, #tpu.memory_space<vmem>>, %arg2: memref<128x128xf32, #tpu.memory_space<vmem>>, %arg3: memref<1x128xf32, #tpu.memory_space<vmem>>, %arg4: memref<1x128xf32, #tpu.memory_space<vmem>>, %arg5: memref<1x128xf32, #tpu.memory_space<vmem>>, %arg6: memref<16x128xf32, #tpu.memory_space<vmem>>) attributes {dimension_semantics = [#tpu.dimension_semantics<parallel>], iteration_bounds = array<i64: 1>, scalar_prefetch = 0 : i64, scratch_operands = 0 : i64, tpu.core_type = #tpu.core_type<tc>, window_params = [{transform_indices = @transform_0, window_bounds = array<i64: 16, 128>}, {pipeline_mode = #tpu.pipeline_mode<synchronous>, transform_indices = @transform_1, window_bounds = array<i64: 128, 128>}, {pipeline_mode = #tpu.pipeline_mode<synchronous>, transform_indices = @transform_2, window_bounds = array<i64: 1, 128>}, {pipeline_mode = #tpu.pipeline_mode<synchronous>, transform_indices = @transform_3, window_bounds = array<i64: 1, 128>}, {pipeline_mode = #tpu.pipeline_mode<synchronous>, transform_indices = @transform_4, window_bounds = array<i64: 1, 128>}, {transform_indices = @transform_5, window_bounds = array<i64: 16, 128>}]} {
    %c0 = arith.constant 0 : index
    %c0_0 = arith.constant 0 : index
    %0 = vector.load %arg1[%c0, %c0_0] : memref<16x128xf32, #tpu.memory_space<vmem>>, vector<16x128xf32>
    %c0_1 = arith.constant 0 : index
    %c0_2 = arith.constant 0 : index
    %1 = vector.load %arg2[%c0_1, %c0_2] : memref<128x128xf32, #tpu.memory_space<vmem>>, vector<128x128xf32>
    %cst = arith.constant dense<0.000000e+00> : vector<16x128xf32>
    %2 = tpu.matmul %0, %1, %cst {dimension_numbers = #tpu.dot_dimension_numbers<[1], [1], [0], [0], [0, 0, 1, 0], [], []>} : vector<16x128xf32>, vector<128x128xf32>, vector<16x128xf32> -> vector<16x128xf32>
    %c0_3 = arith.constant 0 : index
    %c0_4 = arith.constant 0 : index
    %3 = vector.load %arg3[%c0_3, %c0_4] : memref<1x128xf32, #tpu.memory_space<vmem>>, vector<1x128xf32>
    %4 = vector.broadcast %3 : vector<1x128xf32> to vector<16x128xf32>
    %5 = arith.addf %2, %4 : vector<16x128xf32>
    %cst_5 = arith.constant 5.000000e-01 : f32
    %6 = vector.broadcast %cst_5 : f32 to vector<16x128xf32>
    %7 = arith.mulf %6, %5 : vector<16x128xf32>
    %cst_6 = arith.constant 0.707106769 : f32
    %8 = vector.broadcast %cst_6 : f32 to vector<16x128xf32>
    %9 = arith.mulf %5, %8 : vector<16x128xf32>
    %10 = math.erf %9 : vector<16x128xf32>
    %cst_7 = arith.constant 1.000000e+00 : f32
    %11 = vector.broadcast %cst_7 : f32 to vector<16x128xf32>
    %12 = arith.addf %11, %10 : vector<16x128xf32>
    %13 = arith.mulf %7, %12 : vector<16x128xf32>
    %cst_8 = arith.constant dense<0.000000e+00> : vector<16xf32>
    %14 = vector.multi_reduction <add>, %13, %cst_8 [1] : vector<16x128xf32> to vector<16xf32>
    %15 = vector.shape_cast %14 : vector<16xf32> to vector<16x1xf32>
    %16 = arith.mulf %13, %13 : vector<16x128xf32>
    %cst_9 = arith.constant dense<0.000000e+00> : vector<16xf32>
    %17 = vector.multi_reduction <add>, %16, %cst_9 [1] : vector<16x128xf32> to vector<16xf32>
    %18 = vector.shape_cast %17 : vector<16xf32> to vector<16x1xf32>
    %cst_10 = arith.constant 6.250000e-02 : f32
    %19 = vector.broadcast %cst_10 : f32 to vector<16x1xf32>
    %20 = arith.mulf %15, %19 : vector<16x1xf32>
    %cst_11 = arith.constant 6.250000e-02 : f32
    %21 = vector.broadcast %cst_11 : f32 to vector<16x1xf32>
    %22 = arith.mulf %18, %21 : vector<16x1xf32>
    %23 = arith.mulf %20, %20 : vector<16x1xf32>
    %24 = arith.subf %22, %23 : vector<16x1xf32>
    %cst_12 = arith.constant 9.99999996E-13 : f32
    %25 = vector.broadcast %cst_12 : f32 to vector<16x1xf32>
    %26 = arith.addf %24, %25 : vector<16x1xf32>
    %27 = math.rsqrt %26 : vector<16x1xf32>
    %28 = vector.broadcast %20 : vector<16x1xf32> to vector<16x128xf32>
    %29 = arith.subf %13, %28 : vector<16x128xf32>
    %30 = vector.broadcast %27 : vector<16x1xf32> to vector<16x128xf32>
    %31 = arith.mulf %29, %30 : vector<16x128xf32>
    %c0_13 = arith.constant 0 : index
    %c0_14 = arith.constant 0 : index
    %32 = vector.load %arg4[%c0_13, %c0_14] : memref<1x128xf32, #tpu.memory_space<vmem>>, vector<1x128xf32>
    %33 = vector.broadcast %32 : vector<1x128xf32> to vector<16x128xf32>
    %34 = arith.mulf %31, %33 : vector<16x128xf32>
    %c0_15 = arith.constant 0 : index
    %c0_16 = arith.constant 0 : index
    %35 = vector.load %arg5[%c0_15, %c0_16] : memref<1x128xf32, #tpu.memory_space<vmem>>, vector<1x128xf32>
    %36 = vector.broadcast %35 : vector<1x128xf32> to vector<16x128xf32>
    %37 = arith.addf %34, %36 : vector<16x128xf32>
    %c0_17 = arith.constant 0 : index
    %c0_18 = arith.constant 0 : index
    %38 = vector.load %arg6[%c0_17, %c0_18] : memref<16x128xf32, #tpu.memory_space<vmem>>, vector<16x128xf32>
    tpu.vector_store %arg6[%c0_17, %c0_18], %37 {strides = array<i32>} : memref<16x128xf32, #tpu.memory_space<vmem>>, vector<16x128xf32>,
    return
  }
  func.func @transform_0(%arg0: i32) -> (i32, i32) {
    %c0_i32 = arith.constant 0 : i32
    %c0_i32_0 = arith.constant 0 : i32
    return %arg0, %c0_i32 : i32, i32
  }
  func.func @transform_1(%arg0: i32) -> (i32, i32) {
    %c0_i32 = arith.constant 0 : i32
    %c0_i32_0 = arith.constant 0 : i32
    %c0_i32_1 = arith.constant 0 : i32
    return %c0_i32, %c0_i32_0 : i32, i32
  }
  func.func @transform_2(%arg0: i32) -> (i32, i32) {
    %c0_i32 = arith.constant 0 : i32
    %c0_i32_0 = arith.constant 0 : i32
    %c0_i32_1 = arith.constant 0 : i32
    return %c0_i32, %c0_i32_0 : i32, i32
  }
  func.func @transform_3(%arg0: i32) -> (i32, i32) {
    %c0_i32 = arith.constant 0 : i32
    %c0_i32_0 = arith.constant 0 : i32
    %c0_i32_1 = arith.constant 0 : i32
    return %c0_i32, %c0_i32_0 : i32, i32
  }
  func.func @transform_4(%arg0: i32) -> (i32, i32) {
    %c0_i32 = arith.constant 0 : i32
    %c0_i32_0 = arith.constant 0 : i32
    %c0_i32_1 = arith.constant 0 : i32
    return %c0_i32, %c0_i32_0 : i32, i32
  }
  func.func @transform_5(%arg0: i32) -> (i32, i32) {
    %c0_i32 = arith.constant 0 : i32
    %c0_i32_0 = arith.constant 0 : i32
    return %arg0, %c0_i32 : i32, i32
  }
}

</mosaic_0001>

<bundles_post_ra>
// kernel: tpu_custom_call.1
= control target key start
LH: loop header
LB: loop body
LE: loop exit
PB: predicated region body
PF: predicated region fallthrough
CT: control target
= control target key end

     0   :  { %10 = vsyncpa [#allocation3], 0  ;;  %s485_s0 = inlined_call_operand.hbm [shape: f32[16,128], index: 0, kind: input, shape index: {}]   ;;  %s486_s1 = inlined_call_operand.hbm [shape: f32[128,128], index: 1, kind: input, shape index: {}]   ;;  %s487_s2 = inlined_call_operand.vmem [shape: f32[1,128], index: 2, kind: input, shape index: {}]   ;;  %s488_s3 = inlined_call_operand.vmem [shape: f32[1,128], index: 3, kind: input, shape index: {}]   ;;  %s489_s4 = inlined_call_operand.vmem [shape: f32[1,128], index: 4, kind: input, shape index: {}]   ;;  %s490_s5 = inlined_call_operand.hbm [shape: f32[16,128], index: 5, kind: output, shape index: {}]  }
   0x1   :  { %11 = vsyncpa [#allocation6], 0 }
   0x2   :  { %12 = vsyncpa [#allocation4], 0  ;;  %s396_s18 = smov [#allocation2]   ;;  %s324_s22 = scalar_lea.hbm %s485_s0, 256 }
   0x3   :  { %s18_s19 = sshll.u32 %s396_s18, 4  ;;  %p325_p0 = scmp.ne.s32.totalorder %s485_s0, %s324_s22  ;;  %s19_s19 = int_to_ptr.vmem [resolvable:$true] %s18_s19 }
   0x4   :  { %p328_p1 = scmp.lt.u32.totalorder %s324_s22, %s485_s0 }
   0x6   :  { %p330_p2 = pnand %p328_p1, %p325_p0 }
   0x8   :  { %333 = shalt.err (!%p330_p2)
}
   0x9   :  { %s334_s27 = scalar_lea.vmem %s19_s19, 256  ;;  %p339_p4 = scmp.lt.s32.totalorder %s19_s19, %s19_s19 }
   0xa   :  { %p335_p3 = scmp.ne.s32.totalorder %s19_s19, %s334_s27  ;;  %p340_p5 = scmp.lt.s32.totalorder %s334_s27, %s334_s27 }
   0xc   :  { %p341_p6 = por %p340_p5, %p339_p4 }
   0xe   :  { %p342_p7 = pnand %p341_p6, %p335_p3 }
  0x10   :  { %345 = shalt.err (!%p342_p7)
}
  0x11   :  { %s397_s28 = smov 128   ;;  %s398_s29 = smov 8  }
  0x12   :  { %24 = dma.hbm_to_vmem [thread:$0]  %s485_s0, 256, %s19_s19, [#allocation3], %s397_s28, %s397_s28, %s398_s29  }
  0x13   :  { %s399_s7 = smov [#allocation5]   ;;  %s346_s11 = scalar_lea.hbm %s486_s1, 2048 }
  0x14   :  { %s30_s8 = sshll.u32 %s399_s7, 4  ;;  %p347_p8 = scmp.ne.s32.totalorder %s486_s1, %s346_s11  ;;  %s31_s8 = int_to_ptr.vmem [resolvable:$true] %s30_s8 }
  0x15   :  { %p350_p9 = scmp.lt.u32.totalorder %s346_s11, %s486_s1 }
  0x17   :  { %p352_p10 = pnand %p350_p9, %p347_p8 }
  0x19   :  { %355 = shalt.err (!%p352_p10)
}
  0x1a   :  { %s356_s16 = scalar_lea.vmem %s31_s8, 2048  ;;  %p361_p12 = scmp.lt.s32.totalorder %s31_s8, %s31_s8 }
  0x1b   :  { %p357_p11 = scmp.ne.s32.totalorder %s31_s8, %s356_s16  ;;  %p362_p13 = scmp.lt.s32.totalorder %s356_s16, %s356_s16 }
  0x1d   :  { %p363_p0 = por %p362_p13, %p361_p12 }
  0x1f   :  { %p364_p1 = pnand %p363_p0, %p357_p11 }
  0x21   :  { %367 = shalt.err (!%p364_p1)
}
  0x22   :  { %36 = dma.hbm_to_vmem [thread:$0]  %s486_s1, 2048, %s31_s8, [#allocation6], %s397_s28, %s397_s28, %s398_s29  }
  0x23   :  { %390 = dma.done.wait [#allocation3], 256  }
  0x24   :  { %391 = vsyncadd [#allocation3], 4294967040 }
  0x25   :  { %392 = dma.done.wait [#allocation6], 2048  }
  0x26   :  { %393 = vsyncadd [#allocation6], 4294965248  ;;  %v51_v0 = vld [vmem:[#allocation5] sm:$0xff]  ;;  %v52_v1 = vld [vmem:[#allocation5 + $0x8] sm:$0xff]  ;;  %s400_s22 = smov [#allocation7]  }
  0x27   :  { %v53_v2 = vld [vmem:[#allocation5 + $0x10] sm:$0xff]  ;;  %v279_v3 = vpack.c.bf16 %v52_v1, %v51_v0  ;;  %v54_v4 = vld [vmem:[#allocation5 + $0x18] sm:$0xff]  ;;  %v55_v7 = vld [vmem:[#allocation5 + $0x20] sm:$0xff]  ;;  %s210_s23 = sshll.u32 %s400_s22, 4  ;;  %s211_s23 = int_to_ptr.vmem [resolvable:$true] %s210_s23 }
  0x28   :  { %v283_v5 = vpack.c.bf16 %v54_v4, %v53_v2  ;;  %v49_v6 = vld [vmem:[#allocation2] sm:$0xff]  ;;  %v56_v8 = vld [vmem:[#allocation5 + $0x28] sm:$0xff]  ;;  %v58_v11 = vld [vmem:[#allocation5 + $0x38] sm:$0xff]  ;;  %s368_s24 = scalar_lea.vmem %s211_s23, 256  ;;  %p373_p3 = scmp.lt.s32.totalorder %s211_s23, %s211_s23 }
  0x29   :  { %280 = vmatprep.subr.bf16.mxu0 %v279_v3  ;;  %276 = vmatprep.mubr.f32.mxu0 %v49_v6  ;;  %v287_v9 = vpack.c.bf16 %v56_v8, %v55_v7  ;;  %v57_v10 = vld [vmem:[#allocation5 + $0x30] sm:$0xff]  ;;  %v59_v13 = vld [vmem:[#allocation5 + $0x40] sm:$0xff]  ;;  %v60_v14 = vld [vmem:[#allocation5 + $0x48] sm:$0xff]  ;;  %p369_p2 = scmp.ne.s32.totalorder %s211_s23, %s368_s24  ;;  %p374_p4 = scmp.lt.s32.totalorder %s368_s24, %s368_s24 }
  0x2a   :  { %282 = vmatpush3.bf16.xpose.msra.mxu0 %v279_v3  ;;  %v291_v12 = vpack.c.bf16 %v58_v11, %v57_v10  ;;  %v295_v15 = vpack.c.bf16 %v60_v14, %v59_v13  ;;  %v61_v16 = vld [vmem:[#allocation5 + $0x50] sm:$0xff]  ;;  %v62_v17 = vld [vmem:[#allocation5 + $0x58] sm:$0xff]  ;;  %v63_v19 = vld [vmem:[#allocation5 + $0x60] sm:$0xff] }
  0x2b   :  { %284 = vmatprep.subr.bf16.mxu0 %v283_v5  ;;  %v299_v18 = vpack.c.bf16 %v62_v17, %v61_v16  ;;  %v64_v20 = vld [vmem:[#allocation5 + $0x68] sm:$0xff]  ;;  %v65_v22 = vld [vmem:[#allocation5 + $0x70] sm:$0xff]  ;;  %v66_v23 = vld [vmem:[#allocation5 + $0x78] sm:$0xff]  ;;  %p375_p5 = por %p374_p4, %p373_p3 }
  0x2c   :  { %v303_v21 = vpack.c.bf16 %v64_v20, %v63_v19  ;;  %v307_v24 = vpack.c.bf16 %v66_v23, %v65_v22  ;;  %v50_v25 = vld [vmem:[#allocation2 + $0x8] sm:$0xff]  ;;  %v223_v26 = vld [vmem:[%s487_s2] ss:$0 sm:$0xff] }
  0x2d   :  { %v224_v59 = vld [vmem:[%s488_s3] ss:$0 sm:$0xff]  ;;  %p376_p6 = pnand %p375_p5, %p369_p2 }
  0x2e   :  { %v225_v61 = vld [vmem:[%s489_s4] ss:$0 sm:$0xff] }
  0x32   :  { %286 = vmatpush3.bf16.xpose.msra.mxu0 %v283_v5 }
  0x33   :  { %288 = vmatprep.subr.bf16.mxu0 %v287_v9 }
  0x3a   :  { %290 = vmatpush3.bf16.xpose.msra.mxu0 %v287_v9 }
  0x3b   :  { %292 = vmatprep.subr.bf16.mxu0 %v291_v12 }
  0x42   :  { %294 = vmatpush3.bf16.xpose.msra.mxu0 %v291_v12 }
  0x43   :  { %296 = vmatprep.subr.bf16.mxu0 %v295_v15 }
  0x4a   :  { %298 = vmatpush3.bf16.xpose.msra.mxu0 %v295_v15 }
  0x4b   :  { %300 = vmatprep.subr.bf16.mxu0 %v299_v18 }
  0x52   :  { %302 = vmatpush3.bf16.xpose.msra.mxu0 %v299_v18 }
  0x53   :  { %304 = vmatprep.subr.bf16.mxu0 %v303_v21 }
  0x5a   :  { %306 = vmatpush3.bf16.xpose.msra.mxu0 %v303_v21 }
  0x5b   :  { %308 = vmatprep.subr.bf16.mxu0 %v307_v24 }
  0x62   :  { %310 = vmatpush3.bf16.xpose.msra.mxu0 %v307_v24 }
  0x69   :  { %277 = vmatmul.mubr.f32.vlgmr.msra.gmra.mrb[0].mxu0 %v50_v25 }
 0x13c   :  { %v278_v27 = vpop.f32.mrb[0].mxu0 }
 0x13d   :  { %v146_v28 = vadd.f32 %v278_v27, %v223_v26  ;;  %v140_v29 = vpop.f32.mrb[1].mxu0 }
 0x13e   :  { %v141_v30 = vadd.f32 %v223_v26, %v140_v29 }
 0x13f   :  { %v152_v31 = vmul.f32 0.70710677, %v146_v28  ;;  %v150_v38 = vmul.f32 0.5, %v146_v28 }
 0x140   :  { %v151_v32 = vmul.f32 0.70710677, %v141_v30  ;;  %v149_v36 = vmul.f32 0.5, %v141_v30 }
 0x141   :  { %316 = verf.f32 %v152_v31 }
 0x142   :  { %318 = verf.f32 %v151_v32 }
 0x14b   :  { %v317_v33 = vpop.eup %316 }
 0x14c   :  { %v319_v34 = vpop.eup %318  ;;  %v156_v35 = vadd.f32 1.0, %v317_v33 }
 0x14d   :  { %v155_v37 = vadd.f32 1.0, %v319_v34 }
 0x14e   :  { %v158_v41 = vmul.f32 %v156_v35, %v150_v38 }
 0x14f   :  { %v157_v39 = vmul.f32 %v155_v37, %v149_v36 }
 0x150   :  { %v164_v42 = vmul.f32 %v158_v41, %v158_v41 }
 0x151   :  { %159 = vadd.xlane.f32.xlu0 %v157_v39  ;;  %v163_v40 = vmul.f32 %v157_v39, %v157_v39 }
 0x153   :  { %165 = vadd.xlane.f32.xlu1 %v163_v40 }
 0x155   :  { %161 = vadd.xlane.f32.xlu0 %v158_v41 }
 0x157   :  { %167 = vadd.xlane.f32.xlu1 %v164_v42 }
 0x1de   :  { %v160_v43 = vpop.xlane.xlu0 %159 }
 0x1df   :  { %v169_v44 = vmul.f32 0.0625, %v160_v43 }
 0x1e0   :  { %v166_v45 = vpop.xlane.xlu1 %165 }
 0x1e1   :  { %v173_v46 = vmul.f32 %v169_v44, %v169_v44  ;;  %v171_v47 = vmul.f32 0.0625, %v166_v45  ;;  %v181_v57 = vsub.f32 %v157_v39, %v169_v44 }
 0x1e2   :  { %v162_v48 = vpop.xlane.xlu0 %161 }
 0x1e3   :  { %v175_v49 = vsub.f32 %v171_v47, %v173_v46  ;;  %v170_v50 = vmul.f32 0.0625, %v162_v48 }
 0x1e4   :  { %v168_v51 = vpop.xlane.xlu1 %167 }
 0x1e5   :  { %v177_v52 = vadd.f32 1e-12, %v175_v49  ;;  %v174_v53 = vmul.f32 %v170_v50, %v170_v50  ;;  %v172_v54 = vmul.f32 0.0625, %v168_v51  ;;  %v182_v62 = vsub.f32 %v158_v41, %v170_v50 }
 0x1e7   :  { %320 = vrsqrt.f32 %v177_v52  ;;  %v176_v55 = vsub.f32 %v172_v54, %v174_v53 }
 0x1e9   :  { %v178_v56 = vadd.f32 1e-12, %v176_v55 }
 0x1eb   :  { %322 = vrsqrt.f32 %v178_v56 }
 0x1f1   :  { %v321_v58 = vpop.eup %320 }
 0x1f2   :  { %v183_v60 = vmul.f32 %v321_v58, %v181_v57 }
 0x1f4   :  { %v192_v63 = vmul.f32 %v224_v59, %v183_v60 }
 0x1f5   :  { %v323_v0 = vpop.eup %322 }
 0x1f6   :  { %v184_v1 = vmul.f32 %v323_v0, %v182_v62  ;;  %v201_v2 = vadd.f32 %v225_v61, %v192_v63 }
 0x1f8   :  { %v193_v3 = vmul.f32 %v224_v59, %v184_v1  ;;  %203 = vst [vmem:[#allocation7] sm:$0xff] %v201_v2 }
 0x1fa   :  { %v202_v4 = vadd.f32 %v225_v61, %v193_v3 }
 0x1fc   :  { %204 = vst [vmem:[#allocation7 + $0x8] sm:$0xff] %v202_v4 }
 0x1fd   :  { %379 = shalt.err (!%p376_p6)
}
 0x1fe   :  { %s380_s25 = scalar_lea.hbm %s490_s5, 256 }
 0x1ff   :  { %p381_p7 = scmp.ne.s32.totalorder %s490_s5, %s380_s25  ;;  %p384_p8 = scmp.lt.u32.totalorder %s380_s25, %s490_s5 }
 0x201   :  { %p386_p9 = pnand %p384_p8, %p381_p7 }
 0x203   :  { %389 = shalt.err (!%p386_p9)
}
 0x204   :  { %216 = dma.vmem_to_hbm [thread:$0]  %s211_s23, 256, %s490_s5, [#allocation4], %s397_s28, %s397_s28, %s398_s29  }
 0x205   :  { %394 = dma.done.wait [#allocation4], 256  }
 0x206   :  { %395 = vsyncadd [#allocation4], 4294967040 }
 0x207   :  { %220 = vsyncpa [#allocation3], 1 }
 0x208   :  { %221 = vsyncpa [#allocation6], 1 }
 0x209   :  { %222 = vsyncpa [#allocation4], 1 }

</bundles_post_ra>
